<compile_context>
chip_gen: v7x
topology: tpu7x:2x2x1
jax: 0.10.0
libtpu: 0.0.40
codegen_flags: <defaults>
</compile_context>

<pallas_src>
import math

import jax
import jax.numpy as jnp
from jax import lax
from jax.experimental import pallas as pl
from jax.experimental.pallas import tpu as pltpu

LANE = 128                                  # TPU vreg lane width
_MAX_SEG_BYTES = 2 * 1024 * 1024            # cap on in-kernel f32 intermediates
_TARGET_BLOCK_BYTES = 4 * 1024 * 1024       # ~4 MiB tiles (v7x-friendly, fine on all)


# --------------------------------------------------------------------------
# Small helpers
# --------------------------------------------------------------------------
def _vmem_capacity_bytes():
    """Physical VMEM capacity; falls back to the v7x-safe 64 MiB."""
    try:
        cap = int(pltpu.get_tpu_info().vmem_capacity_bytes)
        if cap > 0:
            return cap
    except Exception:
        pass
    return 64 * 1024 * 1024


def _col_segments(n_cols, seg_cols):
    """Static (start, length) pieces covering [0, n_cols); starts are multiples
    of `seg_cols` (itself a multiple of 128), so every piece is lane-aligned."""
    start = 0
    while start < n_cols:
        length = min(seg_cols, n_cols - start)
        yield start, length
        start += length


def _row_sum_f32(get_cols, n_cols, n_seg):
    """Sum over the column axis, returning (rows, 1) f32.

    Adds `n_seg` equal, lane-aligned column segments elementwise (VPU vreg
    adds); only ~1/n_seg of the data (plus a <8-chunk remainder) goes through
    the cross-lane (XLU) reduce, keeping the pooling memory-bound on v6e/v7x.
    `get_cols(start, length)` must return a (rows, length) f32 chunk.
    """
    n_chunks = n_cols // LANE
    seg_chunks = n_chunks // n_seg
    total = None
    done = 0
    if seg_chunks > 0:
        seg_len = seg_chunks * LANE
        acc = get_cols(0, seg_len)
        for s in range(1, n_seg):
            acc = acc + get_cols(s * seg_len, seg_len)
        total = jnp.sum(acc, axis=-1, keepdims=True)
        done = n_seg * seg_len
    rem = n_cols - done
    if rem > 0:
        tail = jnp.sum(get_cols(done, rem), axis=-1, keepdims=True)
        total = tail if total is None else total + tail
    return total


def _fused_n_seg(c, hw):
    return max(8, -(-(c * hw * 4) // _MAX_SEG_BYTES))


def _spatial_tile(hw, c, itemsize, target_bytes=_TARGET_BLOCK_BYTES):
    """Spatial tile (multiple of 128) giving roughly `target_bytes` blocks."""
    per_col = max(1, c * itemsize)
    t = (target_bytes // per_col) // LANE * LANE
    t = max(LANE, t)
    t = min(t, -(-hw // LANE) * LANE)       # never larger than rounded-up HW
    return t


def _gate_mlp(avg_f32, w1, b1, w2, b2):
    """Tiny 1x1-conv MLP (C -> C/2 -> C) on pooled means; always f32."""
    w1f, b1f = w1.astype(jnp.float32), b1.astype(jnp.float32)
    w2f, b2f = w2.astype(jnp.float32), b2.astype(jnp.float32)
    h = avg_f32 @ w1f.T + b1f
    h = jnp.where(h > 0, h, 0.1 * h)                     # LeakyReLU(0.1)
    return jax.nn.sigmoid(h @ w2f.T + b2f)               # (N, C) f32


# --------------------------------------------------------------------------
# Kernels
# --------------------------------------------------------------------------
def _make_fused_kernel(hw, n_seg, mul_seg_cols):
    """Pool + gate MLP + gated multiply on a VMEM-resident (C, HW) tile."""
    inv_hw = 1.0 / float(hw)

    def kernel(x_ref, w1_ref, b1_ref, w2_ref, b2_ref, o_ref):
        def get_cols(start, length):
            return x_ref[0, :, start:start + length].astype(jnp.float32)

        # Global average pool (VPU-heavy segmented reduction).
        avg = _row_sum_f32(get_cols, hw, n_seg) * inv_hw          # (C, 1) f32

        # 1x1 convs on the pooled vector (tiny mat-vecs; exp goes to the EUP).
        h = jnp.dot(w1_ref[...], avg,
                    preferred_element_type=jnp.float32) + b1_ref[...]
        h = jnp.where(h > 0, h, 0.1 * h)                          # LeakyReLU(0.1)
        z = jnp.dot(w2_ref[...], h,
                    preferred_element_type=jnp.float32) + b2_ref[...]
        y = (1.0 / (1.0 + jnp.exp(-z))).astype(o_ref.dtype)       # Sigmoid, (C, 1)

        # Gated multiply in the input dtype, in bounded lane-aligned pieces so
        # compiler-managed VMEM temporaries stay small even for big tiles.
        for a, l in _col_segments(hw, mul_seg_cols):
            o_ref[0, :, a:a + l] = (x_ref[0, :, a:a + l] * y).astype(o_ref.dtype)

    return kernel


def _make_pool_kernel(hw, ta, ragged, n_seg=8):
    """Pass A: (1, C, ta) block -> (C, 1) f32 partial sums (masked ragged tail)."""

    def kernel(x_ref, o_ref):
        base = pl.program_id(1) * ta

        def get_cols(start, length):
            v = x_ref[0, :, start:start + length].astype(jnp.float32)
            if ragged:
                # Mask elements whose global spatial index is past H*W (the
                # out-of-bounds part of the last block contains garbage).
                pos = base + start + lax.broadcasted_iota(jnp.int32, (1, length), 1)
                v = jnp.where(pos < hw, v, 0.0)
            return v

        o_ref[0, 0] = _row_sum_f32(get_cols, ta, n_seg)

    return kernel


def _make_scale_kernel(ta, n_seg=8):
    """Pass B: broadcast multiply by the per-channel gate, in the input dtype."""
    seg_cols = max(LANE, (ta // n_seg) // LANE * LANE)

    def kernel(x_ref, g_ref, o_ref):
        g = g_ref[0]                                    # (C, 1), input dtype
        for a, l in _col_segments(ta, seg_cols):
            o_ref[0, :, a:a + l] = (x_ref[0, :, a:a + l] * g).astype(o_ref.dtype)

    return kernel


# --------------------------------------------------------------------------
# Two-pass (tiled) path for images too large to keep VMEM-resident
# --------------------------------------------------------------------------
def _ca_two_pass(x3, w1, b1, w2, b2, *, hw, vmem_limit):
    N, C, _ = x3.shape
    dtype = x3.dtype
    itemsize = jnp.dtype(dtype).itemsize

    ta = _spatial_tile(hw, C, itemsize)
    S = -(-hw // ta)                     # cdiv: no divisibility requirement on HW
    ragged = (hw % ta) != 0

    cparams = pltpu.CompilerParams(
        dimension_semantics=("parallel", "parallel"),
        vmem_limit_bytes=vmem_limit)

    # Pass A: per-tile partial sums; every block independent -> fully parallel
    # grid (keeps both v7x TensorCores busy even for N == 1).
    part = pl.pallas_call(
        _make_pool_kernel(hw, ta, ragged),
        out_shape=jax.ShapeDtypeStruct((N, S, C, 1), jnp.float32),
        grid=(N, S),
        in_specs=[pl.BlockSpec((1, C, ta), lambda n, t: (n, t, 0))],
        out_specs=pl.BlockSpec((1, 1, C, 1), lambda n, t: (n, t, 0, 0)),
        compiler_params=cparams,
    )(x3)

    # Tiny finishing reduce + gate MLP in plain JAX (O(N*S*C + N*C^2) — noise).
    avg = part[:, :, :, 0].sum(axis=1) * (1.0 / hw)          # (N, C) f32
    y = _gate_mlp(avg, w1, b1, w2, b2)                        # (N, C) f32
    gate = y.astype(dtype).reshape(N, C, 1)

    # Pass B: broadcast multiply.  The gate block index is constant over the
    # inner grid axis, so it is only (re)fetched when the batch index changes;
    # the ragged last spatial tile is handled by Pallas' output-block clipping.
    out3 = pl.pallas_call(
        _make_scale_kernel(ta),
        out_shape=jax.ShapeDtypeStruct((N, C, hw), dtype),
        grid=(N, S),
        in_specs=[pl.BlockSpec((1, C, ta), lambda n, t: (n, t, 0)),
                  pl.BlockSpec((1, C, 1), lambda n, t: (n, 0, 0))],
        out_specs=pl.BlockSpec((1, C, ta), lambda n, t: (n, t, 0)),
        compiler_params=cparams,
    )(x3, gate)
    return out3


# --------------------------------------------------------------------------
# Public wrapper
# --------------------------------------------------------------------------
def ca_forward(x, w1, b1, w2, b2, *, fused_vmem_budget_bytes=None):
    """Channel-attention forward.

    x: (N, C, H, W); w1: (C//2, C); b1: (C//2,); w2: (C, C//2); b2: (C,).
    Returns an array with x's shape and dtype.
    """
    N, C, H, W = x.shape
    C2 = w1.shape[0]
    hw = H * W
    itemsize = jnp.dtype(x.dtype).itemsize

    # (N, C, H, W) -> (N, C, H*W): merges trailing contiguous dims, so it is a
    # metadata-only reshape.  No spatial padding / slicing anywhere.
    x3 = x.reshape(N, C, hw)

    vmem_cap = _vmem_capacity_bytes()
    vmem_limit = int(min(vmem_cap * 3 // 4, 100 * 1024 * 1024))
    if fused_vmem_budget_bytes is None:
        fused_budget = (vmem_limit * 9) // 10
    else:
        fused_budget = fused_vmem_budget_bytes

    # ---- fused-path fit check -------------------------------------------
    # x-in + out blocks are double-buffered (4 * tile); blocks are stored with
    # sublane/lane padding in VMEM; add the bounded in-kernel f32 temporaries.
    # (Double-buffering buys nothing for N == 1, but pl.Buffered(1) is not used
    # to keep lowering risk low — such shapes just fall to the two-pass path.)
    pack = 8 * max(1, 4 // itemsize)              # 8 (f32), 16 (bf16), 32 (int8)
    c_pad = -(-C // pack) * pack
    hw_pad = -(-hw // LANE) * LANE
    tile_vmem = c_pad * hw_pad * itemsize
    weights_vmem = 2 * 4 * (C2 * C + C2 + C * C2 + C)
    n_seg = _fused_n_seg(C, hw)
    scratch_allow = 3 * (-(-(C * hw * 4) // n_seg)) + (1 << 20)
    fused_fits = 4 * tile_vmem + weights_vmem + scratch_allow <= fused_budget

    if fused_fits:
        # Small/medium images: whole per-batch tile VMEM-resident; x is read
        # from HBM exactly once (pool + gate + multiply fused).
        # Note: for N == 1 on v7x this leaves one TensorCore idle; an explicit
        # per-core split of a single image is intentionally not attempted.
        mul_seg_cols = max(LANE, (hw // n_seg) // LANE * LANE)
        out3 = pl.pallas_call(
            _make_fused_kernel(hw, n_seg, mul_seg_cols),
            out_shape=jax.ShapeDtypeStruct((N, C, hw), x.dtype),
            grid=(N,),
            in_specs=[
                pl.BlockSpec((1, C, hw), lambda n: (n, 0, 0)),    # x
                pl.BlockSpec((C2, C), lambda n: (0, 0)),          # w1
                pl.BlockSpec((C2, 1), lambda n: (0, 0)),          # b1
                pl.BlockSpec((C, C2), lambda n: (0, 0)),          # w2
                pl.BlockSpec((C, 1), lambda n: (0, 0)),           # b2
            ],
            out_specs=pl.BlockSpec((1, C, hw), lambda n: (n, 0, 0)),
            compiler_params=pltpu.CompilerParams(
                dimension_semantics=("parallel",),
                vmem_limit_bytes=vmem_limit),
        )(x3,
          w1.astype(jnp.float32), b1.reshape(C2, 1).astype(jnp.float32),
          w2.astype(jnp.float32), b2.reshape(C, 1).astype(jnp.float32))
    else:
        out3 = _ca_two_pass(x3, w1, b1, w2, b2, hw=hw, vmem_limit=vmem_limit)

    return out3.reshape(N, C, H, W)


# --------------------------------------------------------------------------
# Pure-JAX reference (matches the PyTorch semantics)
# --------------------------------------------------------------------------
def ca_reference(x, w1, b1, w2, b2):
    avg = jnp.mean(x, axis=(2, 3))                          # (N, C)
    h = avg @ w1.T + b1                                     # (N, C//2)
    h = jnp.where(h > 0, h, 0.1 * h)
    y = jax.nn.sigmoid(h @ w2.T + b2)                       # (N, C)
    return x * y[:, :, None, None]


if __name__ == "__main__":
    key = jax.random.PRNGKey(0)
    N, C, H, W = 2, 4, 16, 16
    C2 = C // 2

    k_x, k_w1, k_b1, k_w2, k_b2 = jax.random.split(key, 5)
    x = jax.random.normal(k_x, (N, C, H, W), dtype=jnp.float32)
    w1 = jax.random.normal(k_w1, (C2, C), dtype=jnp.float32) * 0.5
    b1 = jax.random.normal(k_b1, (C2,), dtype=jnp.float32) * 0.1
    w2 = jax.random.normal(k_w2, (C, C2), dtype=jnp.float32) * 0.5
    b2 = jax.random.normal(k_b2, (C,), dtype=jnp.float32) * 0.1

    ref = ca_reference(x, w1, b1, w2, b2)

    # 1) Default path for this small shape: fused, VMEM-resident.
    out = jax.block_until_ready(ca_forward(x, w1, b1, w2, b2))
    assert out.shape == x.shape and out.dtype == x.dtype
    assert jnp.allclose(out, ref, atol=1e-5, rtol=1e-5), "fused path mismatch"

    # 2) Force the two-pass tiled path (what very large images take).
    out2 = jax.block_until_ready(
        ca_forward(x, w1, b1, w2, b2, fused_vmem_budget_bytes=0))
    assert jnp.allclose(out2, ref, atol=1e-5, rtol=1e-5), "tiled path mismatch"

    # 3) Ragged spatial size (H*W = 400, not a multiple of 128): no padding is
    #    done outside the kernels; both paths handle the tail internally.
    xr = jax.random.normal(jax.random.PRNGKey(1), (N, C, 20, 20), dtype=jnp.float32)
    refr = ca_reference(xr, w1, b1, w2, b2)
    outr = jax.block_until_ready(ca_forward(xr, w1, b1, w2, b2))
    assert jnp.allclose(outr, refr, atol=1e-5, rtol=1e-5), "ragged fused mismatch"
    outr2 = jax.block_until_ready(
        ca_forward(xr, w1, b1, w2, b2, fused_vmem_budget_bytes=0))
    assert jnp.allclose(outr2, refr, atol=1e-5, rtol=1e-5), "ragged tiled mismatch"

    # 4) bf16 inputs: gate math stays in f32, dominant multiply stays in bf16.
    xb = x.astype(jnp.bfloat16)
    refb = ca_reference(xb.astype(jnp.float32), w1, b1, w2, b2)
    outb = jax.block_until_ready(ca_forward(xb, w1, b1, w2, b2))
    assert outb.dtype == jnp.bfloat16
    assert jnp.allclose(outb.astype(jnp.float32), refb, atol=5e-2, rtol=5e-2), \
        "bf16 path mismatch"

    print("KERNEL_OK")
</pallas_src>

<mosaic_0001>
module attributes {stable_mosaic.version = 11 : i64} {
  func.func @kernel(%arg0: i32, %arg1: memref<1x4x256xf32, #tpu.memory_space<vmem>>, %arg2: memref<2x4xf32, #tpu.memory_space<vmem>>, %arg3: memref<2x1xf32, #tpu.memory_space<vmem>>, %arg4: memref<4x2xf32, #tpu.memory_space<vmem>>, %arg5: memref<4x1xf32, #tpu.memory_space<vmem>>, %arg6: memref<1x4x256xf32, #tpu.memory_space<vmem>>) attributes {dimension_semantics = [#tpu.dimension_semantics<parallel>], iteration_bounds = array<i64: 2>, scalar_prefetch = 0 : i64, scratch_operands = 0 : i64, tpu.core_type = #tpu.core_type<tc>, window_params = [{transform_indices = @transform_0, window_bounds = array<i64: 1, 4, 256>}, {pipeline_mode = #tpu.pipeline_mode<synchronous>, transform_indices = @transform_1, window_bounds = array<i64: 2, 4>}, {pipeline_mode = #tpu.pipeline_mode<synchronous>, transform_indices = @transform_2, window_bounds = array<i64: 2, 1>}, {pipeline_mode = #tpu.pipeline_mode<synchronous>, transform_indices = @transform_3, window_bounds = array<i64: 4, 2>}, {pipeline_mode = #tpu.pipeline_mode<synchronous>, transform_indices = @transform_4, window_bounds = array<i64: 4, 1>}, {transform_indices = @transform_5, window_bounds = array<i64: 1, 4, 256>}]} {
    %c0 = arith.constant 0 : index
    %c0_0 = arith.constant 0 : index
    %c0_1 = arith.constant 0 : index
    %0 = vector.load %arg1[%c0, %c0_0, %c0_1] : memref<1x4x256xf32, #tpu.memory_space<vmem>>, vector<1x4x256xf32>
    %1 = vector.shape_cast %0 : vector<1x4x256xf32> to vector<4x256xf32>
    %cst = arith.constant dense<0.000000e+00> : vector<4xf32>
    %2 = vector.multi_reduction <add>, %1, %cst [1] : vector<4x256xf32> to vector<4xf32>
    %3 = vector.shape_cast %2 : vector<4xf32> to vector<4x1xf32>
    %cst_2 = arith.constant 3.906250e-03 : f32
    %4 = vector.broadcast %cst_2 : f32 to vector<4x1xf32>
    %5 = arith.mulf %3, %4 : vector<4x1xf32>
    %c0_3 = arith.constant 0 : index
    %c0_4 = arith.constant 0 : index
    %6 = vector.load %arg2[%c0_3, %c0_4] : memref<2x4xf32, #tpu.memory_space<vmem>>, vector<2x4xf32>
    %cst_5 = arith.constant dense<0.000000e+00> : vector<2x1xf32>
    %7 = tpu.matmul %6, %5, %cst_5 {dimension_numbers = #tpu.dot_dimension_numbers<[1], [0], [0], [1], [0, 0, 1, 1], [], []>} : vector<2x4xf32>, vector<4x1xf32>, vector<2x1xf32> -> vector<2x1xf32>
    %c0_6 = arith.constant 0 : index
    %c0_7 = arith.constant 0 : index
    %8 = vector.load %arg3[%c0_6, %c0_7] : memref<2x1xf32, #tpu.memory_space<vmem>>, vector<2x1xf32>
    %9 = arith.addf %7, %8 : vector<2x1xf32>
    %cst_8 = arith.constant 0.000000e+00 : f32
    %10 = vector.broadcast %cst_8 : f32 to vector<2x1xf32>
    %11 = arith.cmpf ogt, %9, %10 : vector<2x1xf32>
    %cst_9 = arith.constant 1.000000e-01 : f32
    %12 = vector.broadcast %cst_9 : f32 to vector<2x1xf32>
    %13 = arith.mulf %12, %9 : vector<2x1xf32>
    %14 = arith.select %11, %9, %13 : vector<2x1xi1>, vector<2x1xf32>
    %c0_10 = arith.constant 0 : index
    %c0_11 = arith.constant 0 : index
    %15 = vector.load %arg4[%c0_10, %c0_11] : memref<4x2xf32, #tpu.memory_space<vmem>>, vector<4x2xf32>
    %cst_12 = arith.constant dense<0.000000e+00> : vector<4x1xf32>
    %16 = tpu.matmul %15, %14, %cst_12 {dimension_numbers = #tpu.dot_dimension_numbers<[1], [0], [0], [1], [0, 0, 1, 1], [], []>} : vector<4x2xf32>, vector<2x1xf32>, vector<4x1xf32> -> vector<4x1xf32>
    %c0_13 = arith.constant 0 : index
    %c0_14 = arith.constant 0 : index
    %17 = vector.load %arg5[%c0_13, %c0_14] : memref<4x1xf32, #tpu.memory_space<vmem>>, vector<4x1xf32>
    %18 = arith.addf %16, %17 : vector<4x1xf32>
    %cst_15 = arith.constant 0.000000e+00 : f32
    %19 = vector.broadcast %cst_15 : f32 to vector<4x1xf32>
    %20 = arith.subf %19, %18 : vector<4x1xf32>
    %21 = math.exp %20 : vector<4x1xf32>
    %cst_16 = arith.constant 1.000000e+00 : f32
    %22 = vector.broadcast %cst_16 : f32 to vector<4x1xf32>
    %23 = arith.addf %22, %21 : vector<4x1xf32>
    %cst_17 = arith.constant 1.000000e+00 : f32
    %24 = vector.broadcast %cst_17 : f32 to vector<4x1xf32>
    %25 = arith.divf %24, %23 : vector<4x1xf32>
    %c0_18 = arith.constant 0 : index
    %c0_19 = arith.constant 0 : index
    %c0_20 = arith.constant 0 : index
    %26 = vector.load %arg1[%c0_18, %c0_19, %c0_20] : memref<1x4x256xf32, #tpu.memory_space<vmem>>, vector<1x4x128xf32>
    %27 = vector.shape_cast %26 : vector<1x4x128xf32> to vector<4x128xf32>
    %28 = vector.broadcast %25 : vector<4x1xf32> to vector<4x128xf32>
    %29 = arith.mulf %27, %28 : vector<4x128xf32>
    %c0_21 = arith.constant 0 : index
    %c0_22 = arith.constant 0 : index
    %c0_23 = arith.constant 0 : index
    %30 = vector.load %arg6[%c0_21, %c0_22, %c0_23] : memref<1x4x256xf32, #tpu.memory_space<vmem>>, vector<1x4x128xf32>
    %31 = vector.shape_cast %30 : vector<1x4x128xf32> to vector<4x128xf32>
    %32 = vector.shape_cast %29 : vector<4x128xf32> to vector<1x4x128xf32>
    tpu.vector_store %arg6[%c0_21, %c0_22, %c0_23], %32 {strides = array<i32>} : memref<1x4x256xf32, #tpu.memory_space<vmem>>, vector<1x4x128xf32>,
    %c0_24 = arith.constant 0 : index
    %c0_25 = arith.constant 0 : index
    %c128 = arith.constant 128 : index
    %33 = vector.load %arg1[%c0_24, %c0_25, %c128] : memref<1x4x256xf32, #tpu.memory_space<vmem>>, vector<1x4x128xf32>
    %34 = vector.shape_cast %33 : vector<1x4x128xf32> to vector<4x128xf32>
    %35 = vector.broadcast %25 : vector<4x1xf32> to vector<4x128xf32>
    %36 = arith.mulf %34, %35 : vector<4x128xf32>
    %c0_26 = arith.constant 0 : index
    %c0_27 = arith.constant 0 : index
    %c128_28 = arith.constant 128 : index
    %37 = vector.load %arg6[%c0_26, %c0_27, %c128_28] : memref<1x4x256xf32, #tpu.memory_space<vmem>>, vector<1x4x128xf32>
    %38 = vector.shape_cast %37 : vector<1x4x128xf32> to vector<4x128xf32>
    %39 = vector.shape_cast %36 : vector<4x128xf32> to vector<1x4x128xf32>
    tpu.vector_store %arg6[%c0_26, %c0_27, %c128_28], %39 {strides = array<i32>} : memref<1x4x256xf32, #tpu.memory_space<vmem>>, vector<1x4x128xf32>,
    return
  }
  func.func @transform_0(%arg0: i32) -> (i32, i32, i32) {
    %c0_i32 = arith.constant 0 : i32
    %c0_i32_0 = arith.constant 0 : i32
    %c0_i32_1 = arith.constant 0 : i32
    return %arg0, %c0_i32, %c0_i32_0 : i32, i32, i32
  }
  func.func @transform_1(%arg0: i32) -> (i32, i32) {
    %c0_i32 = arith.constant 0 : i32
    %c0_i32_0 = arith.constant 0 : i32
    %c0_i32_1 = arith.constant 0 : i32
    return %c0_i32, %c0_i32_0 : i32, i32
  }
  func.func @transform_2(%arg0: i32) -> (i32, i32) {
    %c0_i32 = arith.constant 0 : i32
    %c0_i32_0 = arith.constant 0 : i32
    %c0_i32_1 = arith.constant 0 : i32
    return %c0_i32, %c0_i32_0 : i32, i32
  }
  func.func @transform_3(%arg0: i32) -> (i32, i32) {
    %c0_i32 = arith.constant 0 : i32
    %c0_i32_0 = arith.constant 0 : i32
    %c0_i32_1 = arith.constant 0 : i32
    return %c0_i32, %c0_i32_0 : i32, i32
  }
  func.func @transform_4(%arg0: i32) -> (i32, i32) {
    %c0_i32 = arith.constant 0 : i32
    %c0_i32_0 = arith.constant 0 : i32
    %c0_i32_1 = arith.constant 0 : i32
    return %c0_i32, %c0_i32_0 : i32, i32
  }
  func.func @transform_5(%arg0: i32) -> (i32, i32, i32) {
    %c0_i32 = arith.constant 0 : i32
    %c0_i32_0 = arith.constant 0 : i32
    %c0_i32_1 = arith.constant 0 : i32
    return %arg0, %c0_i32, %c0_i32_0 : i32, i32, i32
  }
}

</mosaic_0001>

<bundles_post_ra>
// kernel: tpu_custom_call.1
= control target key start
LH: loop header
LB: loop body
LE: loop exit
PB: predicated region body
PF: predicated region fallthrough
CT: control target
= control target key end

     0   :  { %10 = vsyncpa [#allocation3], 0  ;;  %s923_s0 = inlined_call_operand.hbm [shape: f32[2,4,256], index: 0, kind: input, shape index: {}]   ;;  %s924_s1 = inlined_call_operand.vmem [shape: f32[2,4], index: 1, kind: input, shape index: {}]   ;;  %s925_s2 = inlined_call_operand.vmem [shape: f32[2,1], index: 2, kind: input, shape index: {}]   ;;  %s926_s3 = inlined_call_operand.vmem [shape: f32[4,2], index: 3, kind: input, shape index: {}]   ;;  %s927_s4 = inlined_call_operand.vmem [shape: f32[4,1], index: 4, kind: input, shape index: {}]   ;;  %s928_s5 = inlined_call_operand.hbm [shape: f32[2,4,256], index: 5, kind: output, shape index: {}]  }
   0x1   :  { %12 = vsyncpa [#allocation3 + $0x1], 0 }
   0x2   :  { %13 = vsyncpa [#allocation4], 0 }
   0x3   :  { %15 = vsyncpa [#allocation4 + $0x1], 0  ;;  %s738_s18 = smov 0   ;;  %s740_s19 = smov 0  }
   0x4   :  { %s742_s20 = smov 0   ;;  %s744_s21 = smov 0  }
   0x5 LB: > { %s759_s22 = sadd.s32 4294967295, %s701_s21   ;;  %s516_s23 = sadd.s32 4294967294, %s701_s21   ;;  %s701_s21 = sphi %s744_s21, %s943_s21   ;;  %s697_s20 = sphi %s742_s20, %s942_s20   ;;  %s693_s19 = sphi %s740_s19, %s941_s19   ;;  %s689_s18 = sphi %s738_s18, %s940_s18  }
   0x6   : > { %s763_s24 = sadd.s32 1, %s701_s21   ;;  %s28_s25 = sadd.s32 1, %s697_s20 }
   0x7   : > { %s25_s26 = ssub.s32 %s701_s21, %s763_s24  ;;  %p35_p0 = scmp.ne.s32.totalorder %s697_s20, %s693_s19 }
   0x8   : > { %p26_p1 = scmp.eq.s32.totalorder %s25_s26, 0  ;;  %p36_p2 = scmp.eq.s32.totalorder %s701_s21, 0 }
   0x9   : > { %p41_p3 = scmp.ne.s32.totalorder %s693_s19, %s689_s18  ;;  %p42_p4 = scmp.eq.s32.totalorder %s759_s22, 0 }
   0xa   : > { %s775_s27 = scalar_select %p26_p1, %s697_s20, %s28_s25  }
   0xb   : > { %p777_p5 = por %p36_p2, %p35_p0  ;;  %p781_p6 = por %p42_p4, %p41_p3 }
   0xc   : > { %p149_p7 = scmp.eq.s32.totalorder %s759_s22, 1  ;;  %p155_p8 = scmp.eq.s32.totalorder %s516_s23, 1 }
   0xd   : > { %p562_p10 = scmp.lt.s32.totalorder %s701_s21, 2  ;;  %s187_s7 = sand.u32 1, %s697_s20  }
   0xe   : > { %p788_p11 = por %p149_p7, %p35_p0  ;;  %p792_p12 = por %p155_p8, %p41_p3 }
   0xf   : > { %s534_s8 = sshll.u32 %s701_s21, 7  ;;  %s519_s9 = sshll.u32 %s187_s7, 3 }
  0x10   : > { %s932_s30 = scalar_select %p788_p11, 1, 0 }
  0x11   : > { %s933_s6 = scalar_select %p792_p12, 1, 0 }
  0x12   : > { %s801_s12 = scalar_lea.hbm %s923_s0, %s534_s8  ;;  %s191_s13 = scalar_lea.vmem [#allocation2], %s519_s9 }
  0x13   : > { %s199_s14 = sshll.u32 %s191_s13, 4  ;;  %p805_p13 = pnand %p562_p10, %p777_p5  ;;  %s809_s14 = int_to_ptr.vmem [resolvable:$true] %s199_s14 }
  0x14   : > { %s188_s16 = scalar_lea.sflag [#allocation3], %s187_s7  ;;  %s605_s17 = scalar_lea.hbm %s801_s12, 128 }
  0x15   : > { %p606_p2 = scmp.ne.s32.totalorder %s801_s12, %s605_s17  ;;  %p607_p3 = pneg %p805_p13 }
  0x16   : > { %s610_s26 = scalar_lea.hbm %s923_s0, 256  ;;  %p611_p5 = scmp.lt.u32.totalorder %s801_s12, %s923_s0 }
  0x17   : > { %p608_p4 = pnand %p607_p3, %p606_p2  ;;  %p612_p8 = scmp.lt.u32.totalorder %s610_s26, %s605_s17 }
  0x18   : > { %p614_p9 = scmp.lt.u32.totalorder %s605_s17, %s801_s12 }
  0x19   : > { %p609_p7 = pneg %p608_p4  ;;  %p613_p10 = por %p612_p8, %p611_p5 }
  0x1b   : > { %p615_p0 = por %p614_p9, %p613_p10 }
  0x1d   : > { %p616_p1 = pnand %p615_p0, %p609_p7 }
  0x1f   : > { %619 = shalt.err (!%p616_p1)
}
  0x20   : > { %s620_s7 = scalar_lea.vmem %s809_s14, 128  ;;  %s703_s9 = smov [#allocation2]  }
  0x21   : > { %p621_p2 = scmp.ne.s32.totalorder %s809_s14, %s620_s7  ;;  %s625_s10 = sshll.u32 %s703_s9, 4  ;;  %s626_s10 = int_to_ptr.vmem [resolvable:$false] %s625_s10 }
  0x22   : > { %s627_s11 = scalar_lea.vmem %s626_s10, 256  ;;  %p628_p11 = scmp.lt.s32.totalorder %s809_s14, %s626_s10 }
  0x23   : > { %p623_p4 = pnand %p621_p2, %p607_p3  ;;  %p629_p5 = scmp.lt.s32.totalorder %s627_s11, %s620_s7 }
  0x25   : > { %p624_p12 = pneg %p623_p4  ;;  %p630_p8 = por %p629_p5, %p628_p11 }
  0x27   : > { %p631_p9 = pnand %p630_p8, %p624_p12 }
  0x29   : > { %634 = shalt.err (!%p631_p9)
}
  0x2a   : > { %557 = dma.hbm_to_vmem [thread:$0]  (!%p805_p13), %s801_s12, 128, %s809_s14, %s188_s16  }
  0x2b   : > { %p935_p0 = scmp.lt.s32.totalorder %s701_s21, 3  ;;  %p936_p1 = scmp.ge.s32.totalorder %s701_s21, 1 }
  0x2d   : > { %p205_p3 = pnand %p936_p1, %p935_p0 }
  0x2e   : > { %s843_s13 = sand.u32 (!%p205_p3), 1, %s693_s19  }
  0x2f   : > { %208 = sbr.rel (%p205_p3) target bundleno = 810 (0x32a), region = 40  ;;  %s523_s17 = sshll.u32 (!%p205_p3), %s843_s13, 3 }
  0x30   : > { %s211_s23 = scalar_lea.sflag (!%p205_p3), [#allocation3], %s843_s13  ;;  %s849_s15 = scalar_lea.vmem (!%p205_p3), [#allocation2], %s523_s17 }
  0x36   : > { %680 = dma.done.wait (%p781_p6), %s211_s23, 128  }
  0x37   : > { %682 = vsyncadd (%p781_p6), %s211_s23, 4294967168  ;;  %vm245_vm0 = vcmask 1043456   ;;  %v241_v0 = vld [vmem:[%s849_s15] sm:$0xff]  ;;  %v704_v5 = vmov 0.0   ;;  %vm705_vm1 = vmmov 0   ;;  %vm254_vm2 = vcmask 31744  }
  0x38   : > { %v243_v1 = vcombine.high %v241_v0, %v241_v0  ;;  %v246_v2 = vsel %vm245_vm0, %v241_v0, 0.0  ;;  %540 = vmatprep.subr.mxu0 %v704_v5  ;;  %545 = vmatprep.subr.mxu1 %v704_v5  ;;  %v252_v8 = vld [vmem:[%s924_s1] sm:$0x3]  ;;  %vm340_vm4 = vcmask 1041408   ;;  %vm336_vm5 = vcmask 15360   ;;  %s535_s7 = sshll.u32 %s759_s22, 7 }
  0x39   : > { %542 = vmatprep.mubr.msk.f32.mxu0 %vm705_vm1, %v704_v5  ;;  %547 = vmatprep.mubr.msk.f32.mxu1 %vm705_vm1, %v704_v5  ;;  %v253_v9 = vld [vmem:[%s925_s2] sm:$0x3]  ;;  %v706_v16 = vmov 0   ;;  %v428_v27 = vld [vmem:[%s849_s15 + $0x4] sm:$0xf]  ;;  %s240_s9 = scalar_lea.vmem [#allocation5], %s523_s17  ;;  %s879_s29 = scalar_lea.hbm %s928_s5, %s535_s7 }
  0x3a   : > { %v247_v3 = vsel %vm245_vm0, %v243_v1, 0.0  ;;  %v334_v14 = vld [vmem:[%s926_s3] sm:$0xf]  ;;  %599 = vset.pattern.permute.xlu0 %v706_v16  ;;  %s446_s10 = sshll.u32 %s240_s9, 4  ;;  %p937_p11 = scmp.ne.s32.totalorder %s932_s30, 0  ;;  %s881_s10 = int_to_ptr.vmem [resolvable:$true] %s446_s10 }
  0x3b   : > { %v248_v4 = vadd.f32 %v247_v3, %v246_v2  ;;  %v335_v17 = vld [vmem:[%s927_s4] sm:$0xf]  ;;  %s635_s22 = scalar_lea.vmem %s881_s10, 128  ;;  %s707_s17 = smov [#allocation5]  }
  0x3c   : > { %v420_v26 = vld [vmem:[%s849_s15] sm:$0xf]  ;;  %s432_s15 = scalar_lea.sflag [#allocation4], %s843_s13  ;;  %p636_p6 = scmp.ne.s32.totalorder %s881_s10, %s635_s22 }
  0x3d   : > { %249 = vadd.xlane.f32.xlu0 %v248_v4  ;;  %s639_s12 = sshll.u32 %s707_s17, 4  ;;  %s640_s12 = int_to_ptr.vmem [resolvable:$false] %s639_s12 }
  0x3e   : > { %p637_p12 = pnand %p636_p6, %p937_p11  ;;  %s641_s14 = scalar_lea.vmem %s640_s12, 256 }
  0x3f   : > { %p642_p7 = scmp.lt.s32.totalorder %s881_s10, %s640_s12  ;;  %p643_p10 = scmp.lt.s32.totalorder %s641_s14, %s635_s22 }
  0x40   : > { %p638_p13 = pneg %p637_p12 }
  0x41   : > { %p644_p2 = por %p643_p10, %p642_p7 }
  0x43   : > { %p645_p4 = pnand %p644_p2, %p638_p13 }
  0xca   : > { %v250_v6 = vpop.xlane.xlu0 %249 }
  0xcb   : > { %v251_v7 = vmul.f32 0.00390625, %v250_v6 }
  0xcd   : > { %541 = vmatpush3.msk.msra.mxu0 %vm245_vm0, %v251_v7 }
  0xce   : > { %543 = vmatmul.mubr.msk.f32.vlgmr.msra.gmra.mrb[0].mxu0 %vm254_vm2, %v252_v8 }
 0x1a1   : > { %v327_v10 = vpop.f32.mrb[0].mxu0 }
 0x1a2   : > { %v328_v11 = vadd.f32 %v327_v10, %v253_v9  ;;  %v544_v12 = vpop.f32.mrb[1].mxu0 }
 0x1a4   : > { %v332_v13 = vmul.f32 0.1, %v328_v11  ;;  %vm331_vm3 = vcmp.gt.f32.partialorder %v328_v11, 0.0 }
 0x1a6   : > { %v333_v15 = vsel %vm331_vm3, %v328_v11, %v332_v13 }
 0x1a7   : > { %546 = vmatpush3.msk.msra.mxu1 %vm340_vm4, %v333_v15 }
 0x1a8   : > { %548 = vmatmul.mubr.msk.f32.vlgmr.msra.gmra.mrb[0].mxu1 %vm336_vm5, %v334_v14 }
 0x27b   : > { %v410_v18 = vpop.f32.mrb[0].mxu1 }
 0x27c   : > { %v411_v19 = vadd.f32 %v410_v18, %v335_v17  ;;  %v549_v20 = vpop.f32.mrb[1].mxu1 }
 0x27e   : > { %v414_v21 = vsub.f32 0.0, %v411_v19 }
 0x280   : > { %v415_v22 = vmul.f32 1.442695, %v414_v21 }
 0x282   : > { %601 = vpow2.f32 %v415_v22 }
 0x28c   : > { %v602_v23 = vpop.eup %601 }
 0x28d   : > { %v417_v24 = vadd.f32 1.0, %v602_v23 }
 0x28f   : > { %603 = vrcp.f32 %v417_v24 }
 0x299   : > { %v604_v25 = vpop.eup %603 }
 0x29a   : > { %423 = vperm.xlu0 %599, %v604_v25  }
 0x319   : > { %v424_v28 = vpop.permute.xlu0 %423 }
 0x31a   : > { %v426_v29 = vmul.f32 %v424_v28, %v420_v26  ;;  %v429_v30 = vmul.f32 %v428_v27, %v424_v28 }
 0x31c   : > { %427 = vst [vmem:[%s240_s9] sm:$0xf] %v426_v29  ;;  %430 = vst [vmem:[%s240_s9 + $0x4] sm:$0xf] %v429_v30 }
 0x31d   : > { %648 = shalt.err (!%p645_p4)
}
 0x31e   : > { %s649_s13 = scalar_lea.hbm %s879_s29, 128  ;;  %s653_s26 = scalar_lea.hbm %s928_s5, 256 }
 0x31f   : > { %p650_p5 = scmp.ne.s32.totalorder %s879_s29, %s649_s13  ;;  %p654_p0 = scmp.lt.u32.totalorder %s879_s29, %s928_s5 }
 0x320   : > { %p655_p1 = scmp.lt.u32.totalorder %s653_s26, %s649_s13  ;;  %p657_p6 = scmp.lt.u32.totalorder %s649_s13, %s879_s29 }
 0x321   : > { %p651_p8 = pnand %p650_p5, %p937_p11 }
 0x322   : > { %p656_p3 = por %p655_p1, %p654_p0 }
 0x323   : > { %p652_p9 = pneg %p651_p8 }
 0x324   : > { %p658_p12 = por %p657_p6, %p656_p3 }
 0x326   : > { %p659_p13 = pnand %p658_p12, %p652_p9 }
 0x328   : > { %662 = shalt.err (!%p659_p13)
}
 0x329   : > { %552 = dma.vmem_to_hbm [thread:$0]  (%p937_p11), %s881_s10, 128, %s879_s29, %s432_s15  }
 0x32a PF: > { %s458_s7 = sand.u32 1, %s689_s18   ;;  %p938_p7 = scmp.ne.s32.totalorder %s933_s6, 0 }
 0x32b   : > { %p939_p10 = scmp.ge.s32.totalorder %s701_s21, 2  ;;  %s459_s9 = scalar_lea.sflag [#allocation4], %s458_s7 }
 0x32d   : > { %p559_p2 = pnand %p939_p10, %p938_p7 }
 0x32f   : > { %684 = dma.done.wait (!%p559_p2), %s459_s9, 128  }
 0x330   : > { %686 = vsyncadd (!%p559_p2), %s459_s9, 4294967168  ;;  %p18_p4 = scmp.ge.s32.totalorder %s763_s24, 4   ;;  %s940_s18 = smov %s693_s19 }
 0x331   : > { %s941_s19 = smov %s697_s20  ;;  %s942_s20 = smov %s775_s27 }
 0x332   : > { %s943_s21 = smov %s763_s24  ;;  %20 = sbr.rel (!%p18_p4) target bundleno = 5 (0x5), region = 85 }
 0x339   :  { %464 = vsyncpa [#allocation3], 1 }
 0x33a   :  { %466 = vsyncpa [#allocation3 + $0x1], 1 }
 0x33b   :  { %467 = vsyncpa [#allocation4], 1 }
 0x33c   :  { %469 = vsyncpa [#allocation4 + $0x1], 1 }

</bundles_post_ra>
